<compile_context>
chip_gen: v6e
topology: v6e:2x2x1
jax: 0.10.0
libtpu: 0.0.40
codegen_flags: <defaults>
</compile_context>

<pallas_src>
import math
import numpy as np
import jax
import jax.numpy as jnp
from jax import lax
from jax.experimental import pallas as pl
from jax.experimental.pallas import tpu as pltpu

_MIN_NORM = 1e-15
_MIN_SQ = _MIN_NORM * _MIN_NORM
_K_EPS = 1e-7
_PROJ_EPS = 4e-3  # geoopt float32 projection eps


def _round_up(x, m):
    return ((x + m - 1) // m) * m


# -------- kappa-stereographic scalar helpers (shared by kernel & reference) --------

def _tan_k(x, k):
    """tan_k(x): tanh-based for k<0, Taylor around k=0 otherwise."""
    sk = jnp.sqrt(jnp.abs(k) + _MIN_NORM)
    taylor = x + k * x * x * x / 3.0
    hyp = jnp.tanh(x * sk) / sk
    # TODO(synk): spherical (k > eps) branch needs tan(); curvature inits at 0 and the
    # hyperbolic / flat branches are the geoopt-exact paths for k <= 0.
    return jnp.where(k < -_K_EPS, hyp, taylor)


def _artan_k(x, k):
    sk = jnp.sqrt(jnp.abs(k) + _MIN_NORM)
    taylor = x - k * x * x * x / 3.0
    y = jnp.clip(x * sk, -1.0 + _K_EPS, 1.0 - _K_EPS)
    artanh = 0.5 * jnp.log((1.0 + y) / (1.0 - y))
    hyp = artanh / sk
    # TODO(synk): spherical (k > eps) branch needs arctan().
    return jnp.where(k < -_K_EPS, hyp, taylor)


# -------- full-width reference math (wrapper precompute + pure-JAX reference) --------

def _expmap0(u, k):
    norm = jnp.maximum(jnp.sqrt(jnp.sum(u * u, axis=-1, keepdims=True)), _MIN_NORM)
    return _tan_k(norm, k) * u / norm


def _logmap0(y, k):
    norm = jnp.maximum(jnp.sqrt(jnp.sum(y * y, axis=-1, keepdims=True)), _MIN_NORM)
    return _artan_k(norm, k) * y / norm


def _proj(x, k):
    norm = jnp.maximum(jnp.sqrt(jnp.sum(x * x, axis=-1, keepdims=True)), _MIN_NORM)
    maxnorm = jnp.where(k < 0.0,
                        (1.0 - _PROJ_EPS) / jnp.sqrt(jnp.abs(k) + _MIN_NORM),
                        1e15)
    return jnp.where(norm > maxnorm, x / norm * maxnorm, x)


def _mobius_add(x, y, k):
    x2 = jnp.sum(x * x, axis=-1, keepdims=True)
    y2 = jnp.sum(y * y, axis=-1, keepdims=True)
    xy = jnp.sum(x * y, axis=-1, keepdims=True)
    num = (1.0 - 2.0 * k * xy - k * y2) * x + (1.0 + k * x2) * y
    den = 1.0 - 2.0 * k * xy + k * k * x2 * y2
    return num / jnp.maximum(den, _MIN_NORM)


# ---------------------------------- Pallas kernel ----------------------------------

def _kernel(x_ref, wt_ref, m_in_ref, m_in_t_ref, m_out_ref, m_out_t_ref,
            k_ref, maxnorm_ref, sb_ref, sb_sq_ref, o_ref):
    f32 = jnp.float32
    k = k_ref[...]                 # (1, Hp)  per-head curvature (padded heads: k = 0)
    maxn = maxnorm_ref[...]        # (1, Hp)  per-head projection radius
    m_out = m_out_ref[...]         # (Dout_p, Hp) 0/1 feature->head mask
    m_out_t = m_out_t_ref[...]     # (Hp, Dout_p)

    def head_sum(v, mask):         # segmented per-head reduction (MXU)
        return jnp.dot(v, mask, preferred_element_type=f32)

    def bcast(s, mask_t):          # (tile, Hp) -> (tile, D) per-feature broadcast (MXU)
        return jnp.dot(s, mask_t, preferred_element_type=f32)

    # TODO(synk): for 128-aligned head sizes, replace head_sum/bcast with a
    # (tile, nh, dh) reshape + XLU sum / VPU broadcast to free the MXU entirely.

    x = x_ref[...]                                               # (tile, Din_p) f32

    # ---- logmap0 at the origin, per head (narrow transcendental work) ----
    ss = jnp.maximum(head_sum(x * x, m_in_ref[...]), _MIN_SQ)    # (tile, Hp)
    rsq = lax.rsqrt(ss)                                          # one EUP push per site
    scale = _artan_k(ss * rsq, k) * rsq                          # norm = ss * rsqrt(ss)
    u = x * bcast(scale, m_in_t_ref[...])                        # (tile, Din_p)

    # ---- Euclidean matvec on the merged tangent vectors (MXU) ----
    # Operands in wt_ref.dtype (bf16 by default -> MXU-native rate); f32 accumulation.
    mu = jnp.dot(u.astype(wt_ref.dtype), wt_ref[...],
                 preferred_element_type=f32)                     # (tile, Dout_p)

    # ---- expmap0 + projection, per-head norms propagated analytically ----
    # res = proj(expmap0(mu)) = mu * s_r with a single per-head scale; never materialized.
    ss_mu = jnp.maximum(head_sum(mu * mu, m_out), _MIN_SQ)       # (tile, Hp)
    rsq_mu = lax.rsqrt(ss_mu)
    norm_mu = ss_mu * rsq_mu
    scale_e = _tan_k(norm_mu, k) * rsq_mu                        # expmap0 scale (>= 0)
    norm_res = scale_e * norm_mu                                 # ||expmap0(mu)||_h
    factor = jnp.where(norm_res > maxn, maxn / norm_res, 1.0)    # projection clip
    s_r = scale_e * factor                                       # combined res scale
    x2 = (s_r * s_r) * ss_mu                                     # ||res||^2_h, analytic

    # ---- mobius_add(res, sb, k) with the precomputed stereographic bias ----
    sb = sb_ref[...]                                             # (1, Dout_p)
    y2 = sb_sq_ref[...]                                          # (1, Hp)
    xy = s_r * head_sum(mu * sb, m_out)                          # <res, sb>_h
    den = jnp.maximum(1.0 - 2.0 * k * xy + (k * k) * x2 * y2, _MIN_NORM)
    inv_den = 1.0 / den                                          # narrow -> exact divide
    a = (1.0 - 2.0 * k * xy - k * y2) * inv_den                  # (tile, Hp)
    b = (1.0 + k * x2) * inv_den                                 # (tile, Hp)
    out = mu * bcast(s_r * a, m_out_t) + sb * bcast(b, m_out_t)  # res scaled exactly once

    # ---- final projection; single lane-dense full-row store ----
    ss_o = jnp.maximum(head_sum(out * out, m_out), _MIN_SQ)
    rsq_o = lax.rsqrt(ss_o)
    pf = jnp.where(ss_o * rsq_o > maxn, maxn * rsq_o, 1.0)
    o_ref[...] = out * bcast(pf, m_out_t)


# ------------------------------------ wrapper / factory ------------------------------------

def make_stereographic_linear(weight, bias, c, num_heads, *,
                              batch_tile=512, matmul_dtype=jnp.bfloat16):
    """Build forward(x) with all batch-independent work (transpose, padding, masks,
    stereographic bias) hoisted and done exactly once."""
    f32 = jnp.float32
    dout, din = weight.shape
    nh = int(num_heads)
    dh_in, dh_out = din // nh, dout // nh

    c_arr = jnp.asarray(c, f32).reshape(-1)
    if c_arr.shape[0] == 1:                       # mirror the module's c.repeat(num_heads)
        c_arr = jnp.broadcast_to(c_arr, (nh,))

    # lane-dense feature padding (multiples of 128) -> aligned matmuls, unmasked vst.
    din_p, dout_p = _round_up(din, 128), _round_up(dout, 128)
    hp = max(8, _round_up(nh, 8))

    # W^T: pre-transposed, zero-padded, shipped in the matmul dtype (bf16 halves the
    # VMEM-resident slab), computed once -- not per call.
    wt = jnp.zeros((din_p, dout_p), f32).at[:din, :dout].set(weight.astype(f32).T)
    wt = wt.astype(matmul_dtype)

    # feature -> head 0/1 masks; padded features / heads map to nothing (all-zero rows/cols).
    head_in = np.full((din_p,), -1, np.int64)
    head_in[:din] = np.repeat(np.arange(nh), dh_in)
    mask_in = jnp.asarray((head_in[:, None] == np.arange(hp)[None, :]).astype(np.float32))
    head_out = np.full((dout_p,), -1, np.int64)
    head_out[:dout] = np.repeat(np.arange(nh), dh_out)
    mask_out = jnp.asarray((head_out[:, None] == np.arange(hp)[None, :]).astype(np.float32))
    mask_in_t, mask_out_t = mask_in.T, mask_out.T

    c_pad = jnp.zeros((hp,), f32).at[:nh].set(c_arr)
    k_row = c_pad[None, :]
    maxnorm = jnp.where(c_pad < 0.0,
                        (1.0 - _PROJ_EPS) / jnp.sqrt(jnp.abs(c_pad) + _MIN_NORM),
                        1e15)[None, :]

    # stereographic bias sb = proj(expmap0(bias, k), k): batch independent -> precompute.
    b2 = jnp.asarray(bias, f32).reshape(1, dout)
    sb = jnp.concatenate(
        [_proj(_expmap0(b2[:, h * dh_out:(h + 1) * dh_out], c_arr[h]), c_arr[h])
         for h in range(nh)], axis=-1)
    sb = jnp.zeros((1, dout_p), f32).at[:, :dout].set(sb)
    sb_sq = jnp.dot(sb * sb, mask_out, precision=lax.Precision.HIGHEST)   # (1, hp)

    # generation-aware VMEM budget (v7x: 64 MiB physical; v5e/v6e: 128 MiB).
    try:
        vmem_cap = int(pltpu.get_tpu_info().vmem_capacity_bytes)
    except Exception:
        vmem_cap = 128 * 1024 * 1024
    vmem_cap = max(vmem_cap, 64 * 1024 * 1024)
    vmem_limit = max(min(int(0.70 * vmem_cap), 100 * 1024 * 1024), 32 * 1024 * 1024)

    const = lambda i: (0, 0)
    # TODO(synk): on v7x, single-buffer the resident constants (pipeline_mode=pl.Buffered(1))
    # and N-tile W^T once production Dout makes the resident slab exceed ~20 MiB per TC.

    def forward(x):
        x = jnp.asarray(x, f32)
        lead = x.shape[:-1]
        x = x.reshape(-1, din)
        batch = x.shape[0]

        tb = min(batch_tile, _round_up(batch, 8))
        # prefer >= 2 batch tiles when the batch allows it so ("parallel",) can feed
        # both v7x TensorCores.
        if tb >= 16 and _round_up(batch, tb) // tb < 2:
            tb = _round_up((batch + 1) // 2, 8)
        padded = _round_up(batch, tb)
        x = jnp.pad(x, ((0, padded - batch), (0, din_p - din)))
        grid = (padded // tb,)

        out = pl.pallas_call(
            _kernel,
            out_shape=jax.ShapeDtypeStruct((padded, dout_p), f32),
            grid=grid,
            in_specs=[
                pl.BlockSpec((tb, din_p), lambda i: (i, 0)),   # x         (tiled over batch)
                pl.BlockSpec((din_p, dout_p), const),          # W^T       (VMEM resident)
                pl.BlockSpec((din_p, hp), const),              # mask_in
                pl.BlockSpec((hp, din_p), const),              # mask_in^T
                pl.BlockSpec((dout_p, hp), const),             # mask_out
                pl.BlockSpec((hp, dout_p), const),             # mask_out^T
                pl.BlockSpec((1, hp), const),                  # per-head curvature
                pl.BlockSpec((1, hp), const),                  # per-head proj maxnorm
                pl.BlockSpec((1, dout_p), const),              # stereographic bias sb
                pl.BlockSpec((1, hp), const),                  # per-head |sb|^2
            ],
            out_specs=pl.BlockSpec((tb, dout_p), lambda i: (i, 0)),
            compiler_params=pltpu.CompilerParams(
                dimension_semantics=("parallel",),             # v7x: tiles over both TCs
                vmem_limit_bytes=vmem_limit,
            ),
        )(x, wt, mask_in, mask_in_t, mask_out, mask_out_t, k_row, maxnorm, sb, sb_sq)

        return out[:batch, :dout].reshape(*lead, dout)

    return jax.jit(forward)


def stereographic_linear(x, weight, bias, c, num_heads, **kw):
    """One-shot convenience wrapper (for repeated calls use make_stereographic_linear)."""
    return make_stereographic_linear(weight, bias, c, num_heads, **kw)(x)


# ------------------ pure-JAX reference (per-head loop, same math, no Pallas) ------------------

def ref_forward(x, weight, bias, c, num_heads):
    din = x.shape[1]
    dout = weight.shape[0]
    dh_in, dh_out = din // num_heads, dout // num_heads
    u = jnp.concatenate(
        [_logmap0(x[:, h * dh_in:(h + 1) * dh_in], c[h]) for h in range(num_heads)], -1)
    mu = jnp.dot(u, weight.T, precision=lax.Precision.HIGHEST)
    outs = []
    for h in range(num_heads):
        k = c[h]
        res = _proj(_expmap0(mu[:, h * dh_out:(h + 1) * dh_out], k), k)
        sb = _proj(_expmap0(bias[None, h * dh_out:(h + 1) * dh_out], k), k)
        outs.append(_proj(_mobius_add(res, sb, k), k))
    return jnp.concatenate(outs, -1)


def _project_input(x, c, num_heads):
    """Put demo inputs on the per-head manifold (what this layer actually consumes)."""
    dh = x.shape[1] // num_heads
    return jnp.concatenate(
        [_proj(x[:, h * dh:(h + 1) * dh], c[h]) for h in range(num_heads)], -1)


if __name__ == "__main__":
    key = jax.random.PRNGKey(0)

    def init_params(k, din, dout, nh, cvals):
        kw, kb = jax.random.split(k)
        gain = 1.0 / math.sqrt(2.0)                  # xavier_uniform_(gain=1/sqrt(2))
        bound = gain * math.sqrt(6.0 / (din + dout))
        weight = jax.random.uniform(kw, (dout, din), minval=-bound, maxval=bound,
                                    dtype=jnp.float32)
        bias = 0.05 * jax.random.normal(kb, (dout,), dtype=jnp.float32)
        return weight, bias, jnp.array(cvals, dtype=jnp.float32)

    k0, k1, k2, k3 = jax.random.split(key, 4)

    # --- config A: tiny, non-128-aligned features; exercises hyperbolic/flat heads ---
    batch, din, dout, nh = 8, 32, 64, 4
    weight, bias, c = init_params(k0, din, dout, nh, [-1.0, -0.5, 0.0, -0.1])
    x = _project_input(jax.random.normal(k1, (batch, din), dtype=jnp.float32), c, nh)
    ref = jax.block_until_ready(ref_forward(x, weight, bias, c, nh))

    # exact-parity path (f32 matmul operands)
    fwd_f32 = make_stereographic_linear(weight, bias, c, nh, matmul_dtype=jnp.float32)
    out_f32 = jax.block_until_ready(fwd_f32(x))
    np.testing.assert_allclose(np.asarray(out_f32), np.asarray(ref), rtol=5e-4, atol=1e-5)

    # fast path (default): bf16 MXU operands -> deliberately loosened tolerance.
    fwd_bf16 = make_stereographic_linear(weight, bias, c, nh)
    out_bf16 = jax.block_until_ready(fwd_bf16(x))
    np.testing.assert_allclose(np.asarray(out_bf16), np.asarray(ref), rtol=5e-2, atol=5e-2)

    # --- config B: batch not a tile multiple, non-128 features (padding + 2-tile grid) ---
    batch2, din2, dout2, nh2 = 100, 96, 160, 2
    weight2, bias2, c2 = init_params(k2, din2, dout2, nh2, [-0.7, 0.0])
    x2 = _project_input(jax.random.normal(k3, (batch2, din2), dtype=jnp.float32), c2, nh2)
    ref2 = jax.block_until_ready(ref_forward(x2, weight2, bias2, c2, nh2))
    fwd2 = make_stereographic_linear(weight2, bias2, c2, nh2, matmul_dtype=jnp.float32)
    out2 = jax.block_until_ready(fwd2(x2))
    np.testing.assert_allclose(np.asarray(out2), np.asarray(ref2), rtol=5e-4, atol=1e-5)

    for o in (out_f32, out_bf16, out2):
        assert not bool(jnp.isnan(o).any())

    print("KERNEL_OK")
</pallas_src>

<mosaic_0001>
module attributes {stable_mosaic.version = 11 : i64} {
  func.func @_kernel(%arg0: i32, %arg1: memref<8x128xf32, #tpu.memory_space<vmem>>, %arg2: memref<128x128xf32, #tpu.memory_space<vmem>>, %arg3: memref<128x8xf32, #tpu.memory_space<vmem>>, %arg4: memref<8x128xf32, #tpu.memory_space<vmem>>, %arg5: memref<128x8xf32, #tpu.memory_space<vmem>>, %arg6: memref<8x128xf32, #tpu.memory_space<vmem>>, %arg7: memref<1x8xf32, #tpu.memory_space<vmem>>, %arg8: memref<1x8xf32, #tpu.memory_space<vmem>>, %arg9: memref<1x128xf32, #tpu.memory_space<vmem>>, %arg10: memref<1x8xf32, #tpu.memory_space<vmem>>, %arg11: memref<8x128xf32, #tpu.memory_space<vmem>>) attributes {dimension_semantics = [#tpu.dimension_semantics<parallel>], iteration_bounds = array<i64: 1>, scalar_prefetch = 0 : i64, scratch_operands = 0 : i64, tpu.core_type = #tpu.core_type<tc>, window_params = [{transform_indices = @transform_0, window_bounds = array<i64: 8, 128>}, {pipeline_mode = #tpu.pipeline_mode<synchronous>, transform_indices = @transform_1, window_bounds = array<i64: 128, 128>}, {pipeline_mode = #tpu.pipeline_mode<synchronous>, transform_indices = @transform_2, window_bounds = array<i64: 128, 8>}, {pipeline_mode = #tpu.pipeline_mode<synchronous>, transform_indices = @transform_3, window_bounds = array<i64: 8, 128>}, {pipeline_mode = #tpu.pipeline_mode<synchronous>, transform_indices = @transform_4, window_bounds = array<i64: 128, 8>}, {pipeline_mode = #tpu.pipeline_mode<synchronous>, transform_indices = @transform_5, window_bounds = array<i64: 8, 128>}, {pipeline_mode = #tpu.pipeline_mode<synchronous>, transform_indices = @transform_6, window_bounds = array<i64: 1, 8>}, {pipeline_mode = #tpu.pipeline_mode<synchronous>, transform_indices = @transform_7, window_bounds = array<i64: 1, 8>}, {pipeline_mode = #tpu.pipeline_mode<synchronous>, transform_indices = @transform_8, window_bounds = array<i64: 1, 128>}, {pipeline_mode = #tpu.pipeline_mode<synchronous>, transform_indices = @transform_9, window_bounds = array<i64: 1, 8>}, {transform_indices = @transform_10, window_bounds = array<i64: 8, 128>}]} {
    %c0 = arith.constant 0 : index
    %c0_0 = arith.constant 0 : index
    %0 = vector.load %arg7[%c0, %c0_0] : memref<1x8xf32, #tpu.memory_space<vmem>>, vector<1x8xf32>
    %c0_1 = arith.constant 0 : index
    %c0_2 = arith.constant 0 : index
    %1 = vector.load %arg8[%c0_1, %c0_2] : memref<1x8xf32, #tpu.memory_space<vmem>>, vector<1x8xf32>
    %c0_3 = arith.constant 0 : index
    %c0_4 = arith.constant 0 : index
    %2 = vector.load %arg5[%c0_3, %c0_4] : memref<128x8xf32, #tpu.memory_space<vmem>>, vector<128x8xf32>
    %c0_5 = arith.constant 0 : index
    %c0_6 = arith.constant 0 : index
    %3 = vector.load %arg6[%c0_5, %c0_6] : memref<8x128xf32, #tpu.memory_space<vmem>>, vector<8x128xf32>
    %c0_7 = arith.constant 0 : index
    %c0_8 = arith.constant 0 : index
    %4 = vector.load %arg1[%c0_7, %c0_8] : memref<8x128xf32, #tpu.memory_space<vmem>>, vector<8x128xf32>
    %5 = arith.mulf %4, %4 : vector<8x128xf32>
    %c0_9 = arith.constant 0 : index
    %c0_10 = arith.constant 0 : index
    %6 = vector.load %arg3[%c0_9, %c0_10] : memref<128x8xf32, #tpu.memory_space<vmem>>, vector<128x8xf32>
    %cst = arith.constant dense<0.000000e+00> : vector<8x8xf32>
    %7 = tpu.matmul %5, %6, %cst {dimension_numbers = #tpu.dot_dimension_numbers<[1], [0], [0], [1], [0, 0, 1, 1], [], []>} : vector<8x128xf32>, vector<128x8xf32>, vector<8x8xf32> -> vector<8x8xf32>
    %cst_11 = arith.constant 1.000000e-30 : f32
    %8 = vector.broadcast %cst_11 : f32 to vector<8x8xf32>
    %9 = arith.maximumf %7, %8 : vector<8x8xf32>
    %10 = math.rsqrt %9 : vector<8x8xf32>
    %11 = arith.mulf %9, %10 : vector<8x8xf32>
    %12 = math.absf %0 : vector<1x8xf32>
    %cst_12 = arith.constant 1.000000e-15 : f32
    %13 = vector.broadcast %cst_12 : f32 to vector<1x8xf32>
    %14 = arith.addf %12, %13 : vector<1x8xf32>
    %15 = math.sqrt %14 : vector<1x8xf32>
    %16 = vector.broadcast %0 : vector<1x8xf32> to vector<8x8xf32>
    %17 = arith.mulf %16, %11 : vector<8x8xf32>
    %18 = arith.mulf %17, %11 : vector<8x8xf32>
    %19 = arith.mulf %18, %11 : vector<8x8xf32>
    %cst_13 = arith.constant 3.000000e+00 : f32
    %20 = vector.broadcast %cst_13 : f32 to vector<8x8xf32>
    %21 = arith.divf %19, %20 : vector<8x8xf32>
    %22 = arith.subf %11, %21 : vector<8x8xf32>
    %23 = vector.broadcast %15 : vector<1x8xf32> to vector<8x8xf32>
    %24 = arith.mulf %11, %23 : vector<8x8xf32>
    %cst_14 = arith.constant -0.99999988 : f32
    %cst_15 = arith.constant 0.99999988 : f32
    %25 = vector.broadcast %cst_14 : f32 to vector<8x8xf32>
    %26 = arith.maximumf %25, %24 : vector<8x8xf32>
    %27 = vector.broadcast %cst_15 : f32 to vector<8x8xf32>
    %28 = arith.minimumf %27, %26 : vector<8x8xf32>
    %cst_16 = arith.constant 1.000000e+00 : f32
    %29 = vector.broadcast %cst_16 : f32 to vector<8x8xf32>
    %30 = arith.addf %29, %28 : vector<8x8xf32>
    %cst_17 = arith.constant 1.000000e+00 : f32
    %31 = vector.broadcast %cst_17 : f32 to vector<8x8xf32>
    %32 = arith.subf %31, %28 : vector<8x8xf32>
    %33 = arith.divf %30, %32 : vector<8x8xf32>
    %34 = math.log %33 : vector<8x8xf32>
    %cst_18 = arith.constant 5.000000e-01 : f32
    %35 = vector.broadcast %cst_18 : f32 to vector<8x8xf32>
    %36 = arith.mulf %35, %34 : vector<8x8xf32>
    %37 = vector.broadcast %15 : vector<1x8xf32> to vector<8x8xf32>
    %38 = arith.divf %36, %37 : vector<8x8xf32>
    %cst_19 = arith.constant -1.000000e-07 : f32
    %39 = vector.broadcast %cst_19 : f32 to vector<1x8xf32>
    %40 = arith.cmpf olt, %0, %39 : vector<1x8xf32>
    %41 = vector.shape_cast %40 : vector<1x8xi1> to vector<1x8xi1>
    %42 = vector.broadcast %41 : vector<1x8xi1> to vector<8x8xi1>
    %43 = arith.select %42, %38, %22 : vector<8x8xi1>, vector<8x8xf32>
    %44 = arith.mulf %43, %10 : vector<8x8xf32>
    %c0_20 = arith.constant 0 : index
    %c0_21 = arith.constant 0 : index
    %45 = vector.load %arg4[%c0_20, %c0_21] : memref<8x128xf32, #tpu.memory_space<vmem>>, vector<8x128xf32>
    %cst_22 = arith.constant dense<0.000000e+00> : vector<8x128xf32>
    %46 = tpu.matmul %44, %45, %cst_22 {dimension_numbers = #tpu.dot_dimension_numbers<[1], [0], [0], [1], [0, 0, 1, 1], [], []>} : vector<8x8xf32>, vector<8x128xf32>, vector<8x128xf32> -> vector<8x128xf32>
    %47 = arith.mulf %4, %46 : vector<8x128xf32>
    %c0_23 = arith.constant 0 : index
    %c0_24 = arith.constant 0 : index
    %48 = vector.load %arg2[%c0_23, %c0_24] : memref<128x128xf32, #tpu.memory_space<vmem>>, vector<128x128xf32>
    %cst_25 = arith.constant dense<0.000000e+00> : vector<8x128xf32>
    %49 = tpu.matmul %47, %48, %cst_25 {dimension_numbers = #tpu.dot_dimension_numbers<[1], [0], [0], [1], [0, 0, 1, 1], [], []>} : vector<8x128xf32>, vector<128x128xf32>, vector<8x128xf32> -> vector<8x128xf32>
    %50 = arith.mulf %49, %49 : vector<8x128xf32>
    %cst_26 = arith.constant dense<0.000000e+00> : vector<8x8xf32>
    %51 = tpu.matmul %50, %2, %cst_26 {dimension_numbers = #tpu.dot_dimension_numbers<[1], [0], [0], [1], [0, 0, 1, 1], [], []>} : vector<8x128xf32>, vector<128x8xf32>, vector<8x8xf32> -> vector<8x8xf32>
    %cst_27 = arith.constant 1.000000e-30 : f32
    %52 = vector.broadcast %cst_27 : f32 to vector<8x8xf32>
    %53 = arith.maximumf %51, %52 : vector<8x8xf32>
    %54 = math.rsqrt %53 : vector<8x8xf32>
    %55 = arith.mulf %53, %54 : vector<8x8xf32>
    %56 = math.absf %0 : vector<1x8xf32>
    %cst_28 = arith.constant 1.000000e-15 : f32
    %57 = vector.broadcast %cst_28 : f32 to vector<1x8xf32>
    %58 = arith.addf %56, %57 : vector<1x8xf32>
    %59 = math.sqrt %58 : vector<1x8xf32>
    %60 = vector.broadcast %0 : vector<1x8xf32> to vector<8x8xf32>
    %61 = arith.mulf %60, %55 : vector<8x8xf32>
    %62 = arith.mulf %61, %55 : vector<8x8xf32>
    %63 = arith.mulf %62, %55 : vector<8x8xf32>
    %cst_29 = arith.constant 3.000000e+00 : f32
    %64 = vector.broadcast %cst_29 : f32 to vector<8x8xf32>
    %65 = arith.divf %63, %64 : vector<8x8xf32>
    %66 = arith.addf %55, %65 : vector<8x8xf32>
    %67 = vector.broadcast %59 : vector<1x8xf32> to vector<8x8xf32>
    %68 = arith.mulf %55, %67 : vector<8x8xf32>
    %69 = math.tanh %68 : vector<8x8xf32>
    %70 = vector.broadcast %59 : vector<1x8xf32> to vector<8x8xf32>
    %71 = arith.divf %69, %70 : vector<8x8xf32>
    %cst_30 = arith.constant -1.000000e-07 : f32
    %72 = vector.broadcast %cst_30 : f32 to vector<1x8xf32>
    %73 = arith.cmpf olt, %0, %72 : vector<1x8xf32>
    %74 = vector.shape_cast %73 : vector<1x8xi1> to vector<1x8xi1>
    %75 = vector.broadcast %74 : vector<1x8xi1> to vector<8x8xi1>
    %76 = arith.select %75, %71, %66 : vector<8x8xi1>, vector<8x8xf32>
    %77 = arith.mulf %76, %54 : vector<8x8xf32>
    %78 = arith.mulf %77, %55 : vector<8x8xf32>
    %79 = vector.broadcast %1 : vector<1x8xf32> to vector<8x8xf32>
    %80 = arith.cmpf ogt, %78, %79 : vector<8x8xf32>
    %81 = vector.broadcast %1 : vector<1x8xf32> to vector<8x8xf32>
    %82 = arith.divf %81, %78 : vector<8x8xf32>
    %cst_31 = arith.constant 1.000000e+00 : f32
    %83 = vector.broadcast %cst_31 : f32 to vector<8x8xf32>
    %84 = arith.select %80, %82, %83 : vector<8x8xi1>, vector<8x8xf32>
    %85 = arith.mulf %77, %84 : vector<8x8xf32>
    %86 = arith.mulf %85, %85 : vector<8x8xf32>
    %87 = arith.mulf %86, %53 : vector<8x8xf32>
    %c0_32 = arith.constant 0 : index
    %c0_33 = arith.constant 0 : index
    %88 = vector.load %arg9[%c0_32, %c0_33] : memref<1x128xf32, #tpu.memory_space<vmem>>, vector<1x128xf32>
    %c0_34 = arith.constant 0 : index
    %c0_35 = arith.constant 0 : index
    %89 = vector.load %arg10[%c0_34, %c0_35] : memref<1x8xf32, #tpu.memory_space<vmem>>, vector<1x8xf32>
    %90 = vector.broadcast %88 : vector<1x128xf32> to vector<8x128xf32>
    %91 = arith.mulf %49, %90 : vector<8x128xf32>
    %cst_36 = arith.constant dense<0.000000e+00> : vector<8x8xf32>
    %92 = tpu.matmul %91, %2, %cst_36 {dimension_numbers = #tpu.dot_dimension_numbers<[1], [0], [0], [1], [0, 0, 1, 1], [], []>} : vector<8x128xf32>, vector<128x8xf32>, vector<8x8xf32> -> vector<8x8xf32>
    %93 = arith.mulf %85, %92 : vector<8x8xf32>
    %cst_37 = arith.constant 2.000000e+00 : f32
    %94 = vector.broadcast %cst_37 : f32 to vector<1x8xf32>
    %95 = arith.mulf %94, %0 : vector<1x8xf32>
    %96 = vector.broadcast %95 : vector<1x8xf32> to vector<8x8xf32>
    %97 = arith.mulf %96, %93 : vector<8x8xf32>
    %cst_38 = arith.constant 1.000000e+00 : f32
    %98 = vector.broadcast %cst_38 : f32 to vector<8x8xf32>
    %99 = arith.subf %98, %97 : vector<8x8xf32>
    %100 = arith.mulf %0, %0 : vector<1x8xf32>
    %101 = vector.broadcast %100 : vector<1x8xf32> to vector<8x8xf32>
    %102 = arith.mulf %101, %87 : vector<8x8xf32>
    %103 = vector.broadcast %89 : vector<1x8xf32> to vector<8x8xf32>
    %104 = arith.mulf %102, %103 : vector<8x8xf32>
    %105 = arith.addf %99, %104 : vector<8x8xf32>
    %cst_39 = arith.constant 1.000000e-15 : f32
    %106 = vector.broadcast %cst_39 : f32 to vector<8x8xf32>
    %107 = arith.maximumf %105, %106 : vector<8x8xf32>
    %cst_40 = arith.constant 1.000000e+00 : f32
    %108 = vector.broadcast %cst_40 : f32 to vector<8x8xf32>
    %109 = arith.divf %108, %107 : vector<8x8xf32>
    %cst_41 = arith.constant 2.000000e+00 : f32
    %110 = vector.broadcast %cst_41 : f32 to vector<1x8xf32>
    %111 = arith.mulf %110, %0 : vector<1x8xf32>
    %112 = vector.broadcast %111 : vector<1x8xf32> to vector<8x8xf32>
    %113 = arith.mulf %112, %93 : vector<8x8xf32>
    %cst_42 = arith.constant 1.000000e+00 : f32
    %114 = vector.broadcast %cst_42 : f32 to vector<8x8xf32>
    %115 = arith.subf %114, %113 : vector<8x8xf32>
    %116 = arith.mulf %0, %89 : vector<1x8xf32>
    %117 = vector.broadcast %116 : vector<1x8xf32> to vector<8x8xf32>
    %118 = arith.subf %115, %117 : vector<8x8xf32>
    %119 = arith.mulf %118, %109 : vector<8x8xf32>
    %120 = vector.broadcast %0 : vector<1x8xf32> to vector<8x8xf32>
    %121 = arith.mulf %120, %87 : vector<8x8xf32>
    %cst_43 = arith.constant 1.000000e+00 : f32
    %122 = vector.broadcast %cst_43 : f32 to vector<8x8xf32>
    %123 = arith.addf %122, %121 : vector<8x8xf32>
    %124 = arith.mulf %123, %109 : vector<8x8xf32>
    %125 = arith.mulf %85, %119 : vector<8x8xf32>
    %cst_44 = arith.constant dense<0.000000e+00> : vector<8x128xf32>
    %126 = tpu.matmul %125, %3, %cst_44 {dimension_numbers = #tpu.dot_dimension_numbers<[1], [0], [0], [1], [0, 0, 1, 1], [], []>} : vector<8x8xf32>, vector<8x128xf32>, vector<8x128xf32> -> vector<8x128xf32>
    %127 = arith.mulf %49, %126 : vector<8x128xf32>
    %cst_45 = arith.constant dense<0.000000e+00> : vector<8x128xf32>
    %128 = tpu.matmul %124, %3, %cst_45 {dimension_numbers = #tpu.dot_dimension_numbers<[1], [0], [0], [1], [0, 0, 1, 1], [], []>} : vector<8x8xf32>, vector<8x128xf32>, vector<8x128xf32> -> vector<8x128xf32>
    %129 = vector.broadcast %88 : vector<1x128xf32> to vector<8x128xf32>
    %130 = arith.mulf %129, %128 : vector<8x128xf32>
    %131 = arith.addf %127, %130 : vector<8x128xf32>
    %132 = arith.mulf %131, %131 : vector<8x128xf32>
    %cst_46 = arith.constant dense<0.000000e+00> : vector<8x8xf32>
    %133 = tpu.matmul %132, %2, %cst_46 {dimension_numbers = #tpu.dot_dimension_numbers<[1], [0], [0], [1], [0, 0, 1, 1], [], []>} : vector<8x128xf32>, vector<128x8xf32>, vector<8x8xf32> -> vector<8x8xf32>
    %cst_47 = arith.constant 1.000000e-30 : f32
    %134 = vector.broadcast %cst_47 : f32 to vector<8x8xf32>
    %135 = arith.maximumf %133, %134 : vector<8x8xf32>
    %136 = math.rsqrt %135 : vector<8x8xf32>
    %137 = arith.mulf %135, %136 : vector<8x8xf32>
    %138 = vector.broadcast %1 : vector<1x8xf32> to vector<8x8xf32>
    %139 = arith.cmpf ogt, %137, %138 : vector<8x8xf32>
    %140 = vector.broadcast %1 : vector<1x8xf32> to vector<8x8xf32>
    %141 = arith.mulf %140, %136 : vector<8x8xf32>
    %cst_48 = arith.constant 1.000000e+00 : f32
    %142 = vector.broadcast %cst_48 : f32 to vector<8x8xf32>
    %143 = arith.select %139, %141, %142 : vector<8x8xi1>, vector<8x8xf32>
    %cst_49 = arith.constant dense<0.000000e+00> : vector<8x128xf32>
    %144 = tpu.matmul %143, %3, %cst_49 {dimension_numbers = #tpu.dot_dimension_numbers<[1], [0], [0], [1], [0, 0, 1, 1], [], []>} : vector<8x8xf32>, vector<8x128xf32>, vector<8x128xf32> -> vector<8x128xf32>
    %145 = arith.mulf %131, %144 : vector<8x128xf32>
    %c0_50 = arith.constant 0 : index
    %c0_51 = arith.constant 0 : index
    %146 = vector.load %arg11[%c0_50, %c0_51] : memref<8x128xf32, #tpu.memory_space<vmem>>, vector<8x128xf32>
    tpu.vector_store %arg11[%c0_50, %c0_51], %145 {strides = array<i32>} : memref<8x128xf32, #tpu.memory_space<vmem>>, vector<8x128xf32>,
    return
  }
  func.func @transform_0(%arg0: i32) -> (i32, i32) {
    %c0_i32 = arith.constant 0 : i32
    %c0_i32_0 = arith.constant 0 : i32
    return %arg0, %c0_i32 : i32, i32
  }
  func.func @transform_1(%arg0: i32) -> (i32, i32) {
    %c0_i32 = arith.constant 0 : i32
    %c0_i32_0 = arith.constant 0 : i32
    %c0_i32_1 = arith.constant 0 : i32
    return %c0_i32, %c0_i32_0 : i32, i32
  }
  func.func @transform_2(%arg0: i32) -> (i32, i32) {
    %c0_i32 = arith.constant 0 : i32
    %c0_i32_0 = arith.constant 0 : i32
    %c0_i32_1 = arith.constant 0 : i32
    return %c0_i32, %c0_i32_0 : i32, i32
  }
  func.func @transform_3(%arg0: i32) -> (i32, i32) {
    %c0_i32 = arith.constant 0 : i32
    %c0_i32_0 = arith.constant 0 : i32
    %c0_i32_1 = arith.constant 0 : i32
    return %c0_i32, %c0_i32_0 : i32, i32
  }
  func.func @transform_4(%arg0: i32) -> (i32, i32) {
    %c0_i32 = arith.constant 0 : i32
    %c0_i32_0 = arith.constant 0 : i32
    %c0_i32_1 = arith.constant 0 : i32
    return %c0_i32, %c0_i32_0 : i32, i32
  }
  func.func @transform_5(%arg0: i32) -> (i32, i32) {
    %c0_i32 = arith.constant 0 : i32
    %c0_i32_0 = arith.constant 0 : i32
    %c0_i32_1 = arith.constant 0 : i32
    return %c0_i32, %c0_i32_0 : i32, i32
  }
  func.func @transform_6(%arg0: i32) -> (i32, i32) {
    %c0_i32 = arith.constant 0 : i32
    %c0_i32_0 = arith.constant 0 : i32
    %c0_i32_1 = arith.constant 0 : i32
    return %c0_i32, %c0_i32_0 : i32, i32
  }
  func.func @transform_7(%arg0: i32) -> (i32, i32) {
    %c0_i32 = arith.constant 0 : i32
    %c0_i32_0 = arith.constant 0 : i32
    %c0_i32_1 = arith.constant 0 : i32
    return %c0_i32, %c0_i32_0 : i32, i32
  }
  func.func @transform_8(%arg0: i32) -> (i32, i32) {
    %c0_i32 = arith.constant 0 : i32
    %c0_i32_0 = arith.constant 0 : i32
    %c0_i32_1 = arith.constant 0 : i32
    return %c0_i32, %c0_i32_0 : i32, i32
  }
  func.func @transform_9(%arg0: i32) -> (i32, i32) {
    %c0_i32 = arith.constant 0 : i32
    %c0_i32_0 = arith.constant 0 : i32
    %c0_i32_1 = arith.constant 0 : i32
    return %c0_i32, %c0_i32_0 : i32, i32
  }
  func.func @transform_10(%arg0: i32) -> (i32, i32) {
    %c0_i32 = arith.constant 0 : i32
    %c0_i32_0 = arith.constant 0 : i32
    return %arg0, %c0_i32 : i32, i32
  }
}

</mosaic_0001>

<bundles_post_ra>
// kernel: forward.1
= control target key start
LH: loop header
LB: loop body
LE: loop exit
PB: predicated region body
PF: predicated region fallthrough
CT: control target
= control target key end

     0   :  { %15 = vsyncpa [#allocation3], 0  ;;  %s1671_s0 = inlined_call_operand.vmem [shape: f32[8,128], index: 0, kind: input, shape index: {}]   ;;  %s1672_s1 = inlined_call_operand.hbm [shape: f32[128,128], index: 1, kind: input, shape index: {}]   ;;  %s1673_s2 = inlined_call_operand.hbm [shape: f32[128,8], index: 2, kind: input, shape index: {}]   ;;  %s1674_s3 = inlined_call_operand.vmem [shape: f32[8,128], index: 3, kind: input, shape index: {}]   ;;  %s1675_s4 = inlined_call_operand.hbm [shape: f32[128,8], index: 4, kind: input, shape index: {}]   ;;  %s1676_s5 = inlined_call_operand.vmem [shape: f32[8,128], index: 5, kind: input, shape index: {}]   ;;  %s1677_s6 = inlined_call_operand.vmem [shape: f32[1,8], index: 6, kind: input, shape index: {}]   ;;  %s1678_s7 = inlined_call_operand.vmem [shape: f32[1,8], index: 7, kind: input, shape index: {}]   ;;  %s1679_s8 = inlined_call_operand.vmem [shape: f32[1,128], index: 8, kind: input, shape index: {}]   ;;  %s1680_s9 = inlined_call_operand.vmem [shape: f32[1,8], index: 9, kind: input, shape index: {}]   ;;  %s1681_s10 = inlined_call_operand.hbm [shape: f32[8,128], index: 10, kind: output, shape index: {}]  }
   0x1   :  { %16 = vsyncpa [#allocation6], 0 }
   0x2   :  { %17 = vsyncpa [#allocation4], 0  ;;  %s1343_s13 = smov [#allocation5]   ;;  %s1344_s15 = smov [#allocation2]  }
   0x3   :  { %s37_s14 = sshll.u32 %s1343_s13, 4  ;;  %s25_s16 = sshll.u32 %s1344_s15, 4  ;;  %s38_s14 = int_to_ptr.vmem [resolvable:$true] %s37_s14  ;;  %s26_s16 = int_to_ptr.vmem [resolvable:$true] %s25_s16 }
   0x4   :  { %s1265_s17 = scalar_lea.vmem %s38_s14, 2048  ;;  %p1270_p1 = scmp.lt.s32.totalorder %s38_s14, %s38_s14 }
   0x5   :  { %p1266_p0 = scmp.ne.s32.totalorder %s38_s14, %s1265_s17  ;;  %p1271_p2 = scmp.lt.s32.totalorder %s1265_s17, %s1265_s17 }
   0x7   :  { %p1272_p3 = por %p1271_p2, %p1270_p1 }
   0x9   :  { %p1273_p4 = pnand %p1272_p3, %p1266_p0 }
   0xb   :  { %1276 = shalt.err (!%p1273_p4)
}
   0xc   :  { %s1345_s18 = smov 128   ;;  %s1346_s19 = smov 8  }
   0xd   :  { %43 = dma.hbm_to_vmem [thread:$0]  %s1673_s2, 2048, %s38_s14, [#allocation6], %s1345_s18, %s1345_s18, %s1346_s19  }
   0xe   :  { %s1285_s22 = scalar_lea.vmem %s26_s16, 2048  ;;  %p1290_p6 = scmp.lt.s32.totalorder %s26_s16, %s26_s16 }
   0xf   :  { %p1286_p5 = scmp.ne.s32.totalorder %s26_s16, %s1285_s22  ;;  %p1291_p7 = scmp.lt.s32.totalorder %s1285_s22, %s1285_s22 }
  0x11   :  { %p1292_p8 = por %p1291_p7, %p1290_p6 }
  0x13   :  { %p1293_p9 = pnand %p1292_p8, %p1286_p5 }
  0x15   :  { %1296 = shalt.err (!%p1293_p9)
}
  0x16   :  { %31 = dma.hbm_to_vmem [thread:$0]  %s1672_s1, 2048, %s26_s16, [#allocation3], %s1345_s18, %s1345_s18, %s1346_s19  }
  0x17   :  { %s1347_s25 = smov [#allocation7]  }
  0x18   :  { %s51_s26 = sshll.u32 %s1347_s25, 4  ;;  %s52_s26 = int_to_ptr.vmem [resolvable:$true] %s51_s26 }
  0x19   :  { %s1305_s27 = scalar_lea.vmem %s52_s26, 2048  ;;  %p1310_p11 = scmp.lt.s32.totalorder %s52_s26, %s52_s26 }
  0x1a   :  { %p1306_p10 = scmp.ne.s32.totalorder %s52_s26, %s1305_s27  ;;  %p1311_p12 = scmp.lt.s32.totalorder %s1305_s27, %s1305_s27 }
  0x1c   :  { %p1312_p13 = por %p1311_p12, %p1310_p11 }
  0x1e   :  { %p1313_p0 = pnand %p1312_p13, %p1306_p10 }
  0x20   :  { %1316 = shalt.err (!%p1313_p0)
}
  0x21   :  { %57 = dma.hbm_to_vmem [thread:$0]  %s1675_s4, 2048, %s52_s26, [#allocation6], %s1345_s18, %s1345_s18, %s1346_s19  }
  0x22   :  { %1337 = dma.done.wait [#allocation3], 2048  }
  0x23   :  { %1338 = vsyncadd [#allocation3], 4294965248 }
  0x24   :  { %1339 = dma.done.wait [#allocation6], 4096  }
  0x25   :  { %1340 = vsyncadd [#allocation6], 4294963200  ;;  %v1348_v0 = vmov 0.0   ;;  %vm1349_vm0 = vmmov 0   ;;  %v113_v1 = vld [vmem:[#allocation5 + $0x78] sm:$0xff]  ;;  %v112_v2 = vld [vmem:[#allocation5 + $0x70] sm:$0xff]  ;;  %v197_v27 = vlaneseq }
  0x26   :  { %1033 = vmatprep.subr.mxu0 %v1348_v0  ;;  %1065 = vmatprep.mubr.msk.f32.mxu0 %vm1349_vm0, %v1348_v0  ;;  %v111_v3 = vld [vmem:[#allocation5 + $0x68] sm:$0xff]  ;;  %v110_v4 = vld [vmem:[#allocation5 + $0x60] sm:$0xff]  ;;  %v109_v5 = vld [vmem:[#allocation5 + $0x58] sm:$0xff]  ;;  %v1350_v47 = vmov 0   ;;  %vm236_vm5 = vcmask 64512  }
  0x27   :  { %1068 = vmatprep.subr.mxu1 %v1348_v0  ;;  %1070 = vmatprep.mubr.msk.f32.mxu1 %vm1349_vm0, %v1348_v0  ;;  %v108_v6 = vld [vmem:[#allocation5 + $0x50] sm:$0xff]  ;;  %v107_v7 = vld [vmem:[#allocation5 + $0x48] sm:$0xff]  ;;  %v106_v8 = vld [vmem:[#allocation5 + $0x40] sm:$0xff]  ;;  %v198_v29 = vshrl.u32 %v197_v27, 7 }
  0x28   :  { %1034 = vmatpush3.msra.mxu0 %v113_v1  ;;  %v105_v9 = vld [vmem:[#allocation5 + $0x38] sm:$0xff]  ;;  %v104_v10 = vld [vmem:[#allocation5 + $0x30] sm:$0xff]  ;;  %v103_v11 = vld [vmem:[#allocation5 + $0x28] sm:$0xff] }
  0x29   :  { %1035 = vmatprep.subr.mxu0 %v1348_v0  ;;  %v102_v12 = vld [vmem:[#allocation5 + $0x20] sm:$0xff]  ;;  %v101_v13 = vld [vmem:[#allocation5 + $0x18] sm:$0xff]  ;;  %v100_v14 = vld [vmem:[#allocation5 + $0x10] sm:$0xff]  ;;  %v1457_v32 = vsub.s32 0, %v198_v29 }
  0x2a   :  { %1036 = vmatpush3.msra.mxu0 %v112_v2  ;;  %v1437_v15 = vld [vmem:[%s1671_s0] sm:$0xff]  ;;  %v99_v16 = vld [vmem:[#allocation5 + $0x8] sm:$0xff]  ;;  %v326_v60 = vld [vmem:[#allocation2 + $0x78] sm:$0xff] }
  0x2b   :  { %1037 = vmatprep.subr.mxu0 %v1348_v0  ;;  %v98_v17 = vld [vmem:[#allocation5] sm:$0xff]  ;;  %v97_v18 = vmul.f32 %v1437_v15, %v1437_v15  ;;  %v325_v61 = vld [vmem:[#allocation2 + $0x70] sm:$0xff]  ;;  %v324_v62 = vld [vmem:[#allocation2 + $0x68] sm:$0xff] }
  0x2c   :  { %1038 = vmatpush3.msra.mxu0 %v111_v3  ;;  %v235_v19 = vld [vmem:[%s1674_s3] sm:$0xff]  ;;  %v322_v1 = vld [vmem:[#allocation2 + $0x58] sm:$0xff]  ;;  %v321_v2 = vld [vmem:[#allocation2 + $0x50] sm:$0xff] }
  0x2d   :  { %1039 = vmatprep.subr.mxu0 %v1348_v0  ;;  %1069 = vmatpush3.msra.mxu1 %v235_v19  ;;  %v1454_v20 = vld [vmem:[%s1677_s6] sm:$0x1]  ;;  %v320_v3 = vld [vmem:[#allocation2 + $0x48] sm:$0xff]  ;;  %v1519_v19 = vld [vmem:[#allocation7 + $0x50] sm:$0xff] }
  0x2e   :  { %1040 = vmatpush3.msra.mxu0 %v110_v4  ;;  %1073 = vmatprep.subr.mxu1 %v1348_v0  ;;  %v187_v21 = vand.u32 2147483647, %v1454_v20  ;;  %v1465_v42 = vrot.slane %v1454_v20, %v1457_v32  ;;  %vm226_vm3 = vcmp.lt.f32.partialorder %v1454_v20, -1e-07  ;;  %v323_v63 = vld [vmem:[#allocation2 + $0x60] sm:$0xff]  ;;  %v1547_v27 = vld [vmem:[#allocation7 + $0x18] sm:$0xff] }
  0x2f   :  { %1041 = vmatprep.subr.mxu0 %v1348_v0  ;;  %v227_v48 = vsel %vm226_vm3, 1, %v1350_v47  ;;  %v319_v4 = vld [vmem:[#allocation2 + $0x40] sm:$0xff] }
  0x30   :  { %1042 = vmatpush3.msra.mxu0 %v109_v5  ;;  %v188_v22 = vadd.f32 1e-15, %v187_v21  ;;  %v231_v50 = vrot.slane %v227_v48, %v1457_v32  ;;  %v318_v5 = vld [vmem:[#allocation2 + $0x38] sm:$0xff]  ;;  %v1523_v21 = vld [vmem:[#allocation7 + $0x48] sm:$0xff] }
  0x31   :  { %1043 = vmatprep.subr.mxu0 %v1348_v0 }
  0x32   :  { %1044 = vmatpush3.msra.mxu0 %v108_v6  ;;  %1237 = vrsqrt.f32 %v188_v22  ;;  %vm191_vm1 = vcmp.eq.f32.partialorder %v188_v22, inf  ;;  %v194_v30 = vand.u32 2147483648, %v188_v22  ;;  %vm193_vm2 = vcmp.eq.f32.partialorder %v188_v22, 0.0  ;;  %v317_v6 = vld [vmem:[#allocation2 + $0x30] sm:$0xff] }
  0x33   :  { %1045 = vmatprep.subr.mxu0 %v1348_v0  ;;  %vm1473_vm4 = vcmp.eq.s32.totalorder %v231_v50, 1 }
  0x34   :  { %1046 = vmatpush3.msra.mxu0 %v107_v7  ;;  %v316_v7 = vld [vmem:[#allocation2 + $0x28] sm:$0xff] }
  0x35   :  { %1047 = vmatprep.subr.mxu0 %v1348_v0 }
  0x36   :  { %1048 = vmatpush3.msra.mxu0 %v106_v8  ;;  %v315_v8 = vld [vmem:[#allocation2 + $0x20] sm:$0xff] }
  0x37   :  { %1049 = vmatprep.subr.mxu0 %v1348_v0 }
  0x38   :  { %1050 = vmatpush3.msra.mxu0 %v105_v9  ;;  %v314_v9 = vld [vmem:[#allocation2 + $0x18] sm:$0xff] }
  0x39   :  { %1051 = vmatprep.subr.mxu0 %v1348_v0 }
  0x3a   :  { %1052 = vmatpush3.msra.mxu0 %v104_v10  ;;  %v313_v10 = vld [vmem:[#allocation2 + $0x10] sm:$0xff] }
  0x3b   :  { %1053 = vmatprep.subr.mxu0 %v1348_v0 }
  0x3c   :  { %1054 = vmatpush3.msra.mxu0 %v103_v11  ;;  %v312_v11 = vld [vmem:[#allocation2 + $0x8] sm:$0xff] }
  0x3d   :  { %1055 = vmatprep.subr.mxu0 %v1348_v0 }
  0x3e   :  { %1056 = vmatpush3.msra.mxu0 %v102_v12  ;;  %v311_v12 = vld [vmem:[#allocation2] sm:$0xff] }
  0x3f   :  { %1057 = vmatprep.subr.mxu0 %v1348_v0  ;;  %v1238_v25 = vpop.eup %1237 }
  0x40   :  { %1058 = vmatpush3.msra.mxu0 %v101_v13  ;;  %v190_v28 = vmul.f32 %v1238_v25, %v188_v22  ;;  %v1499_v13 = vld [vmem:[#allocation7 + $0x78] sm:$0xff]  ;;  %v1539_v25 = vld [vmem:[#allocation7 + $0x28] sm:$0xff] }
  0x41   :  { %1059 = vmatprep.subr.mxu0 %v1348_v0 }
  0x42   :  { %1060 = vmatpush3.msra.mxu0 %v100_v14  ;;  %v192_v31 = vsel %vm191_vm1, %v188_v22, %v190_v28  ;;  %v1503_v14 = vld [vmem:[#allocation7 + $0x70] sm:$0xff]  ;;  %v1527_v22 = vld [vmem:[#allocation7 + $0x40] sm:$0xff] }
  0x43   :  { %1061 = vmatprep.subr.mxu0 %v1348_v0  ;;  %v195_v33 = vsel %vm193_vm2, %v194_v30, %v192_v31  ;;  %v1551_v28 = vld [vmem:[#allocation7 + $0x10] sm:$0xff] }
  0x44   :  { %1062 = vmatpush3.msra.mxu0 %v99_v16  ;;  %v1460_v34 = vrot.slane %v195_v33, %v1457_v32  ;;  %v1507_v16 = vld [vmem:[#allocation7 + $0x68] sm:$0xff]  ;;  %v79_v33 = vld [vmem:[#allocation7] sm:$0xff] }
  0x45   :  { %1063 = vmatprep.subr.mxu0 %v1348_v0 }
  0x46   :  { %1064 = vmatpush3.msra.mxu0 %v98_v17  ;;  %v1511_v17 = vld [vmem:[#allocation7 + $0x60] sm:$0xff] }
  0x47   :  { %1066 = vmatmul.mubr.f32.vlgmr.msra.gmra.mxu0 %v97_v18  ;;  %1108 = vmatprep.subr.mxu0 %v1348_v0  ;;  %v1515_v18 = vld [vmem:[#allocation7 + $0x58] sm:$0xff] }
  0x48   :  { %1140 = vmatprep.mubr.msk.f32.mxu0 %vm1349_vm0, %v1348_v0  ;;  %1109 = vmatpush3.msra.mxu0 %v1499_v13 }
  0x49   :  { %1110 = vmatprep.subr.mxu0 %v1348_v0 }
  0x4a   :  { %1111 = vmatpush3.msra.mxu0 %v1503_v14 }
  0x4b   :  { %1112 = vmatprep.subr.mxu0 %v1348_v0 }
  0x4c   :  { %1113 = vmatpush3.msra.mxu0 %v1507_v16 }
  0x4d   :  { %1114 = vmatprep.subr.mxu0 %v1348_v0 }
  0x4e   :  { %1115 = vmatpush3.msra.mxu0 %v1511_v17 }
  0x4f   :  { %1116 = vmatprep.subr.mxu0 %v1348_v0 }
  0x50   :  { %1117 = vmatpush3.msra.mxu0 %v1515_v18 }
  0x51   :  { %1118 = vmatprep.subr.mxu0 %v1348_v0 }
  0x52   :  { %1119 = vmatpush3.msra.mxu0 %v1519_v19 }
  0x53   :  { %1120 = vmatprep.subr.mxu0 %v1348_v0 }
  0x54   :  { %1121 = vmatpush3.msra.mxu0 %v1523_v21 }
  0x55   :  { %1122 = vmatprep.subr.mxu0 %v1348_v0 }
  0x56   :  { %1123 = vmatpush3.msra.mxu0 %v1527_v22 }
  0x57   :  { %1124 = vmatprep.subr.mxu0 %v1348_v0 }
 0x107   :  { %v180_v23 = vpop.f32.mrf.mxu0 }
 0x108   :  { %v184_v24 = vmax.f32 %v180_v23, 1e-30  ;;  %v1531_v23 = vld [vmem:[#allocation7 + $0x38] sm:$0xff] }
 0x109   :  { %v1067_v26 = vpop.f32.mrf.mxu0  ;;  %1125 = vmatpush3.msra.mxu0 %v1531_v23 }
 0x10a   :  { %1239 = vrsqrt.f32 %v184_v24  ;;  %1126 = vmatprep.subr.mxu0 %v1348_v0  ;;  %v1543_v26 = vld [vmem:[#allocation7 + $0x20] sm:$0xff] }
 0x117   :  { %v1240_v35 = vpop.eup %1239 }
 0x118   :  { %v186_v36 = vmul.f32 %v1240_v35, %v184_v24  ;;  %v1535_v24 = vld [vmem:[#allocation7 + $0x30] sm:$0xff] }
 0x119   :  { %1127 = vmatpush3.msra.mxu0 %v1535_v24 }
 0x11a   :  { %v214_v37 = vmul.f32 %v1460_v34, %v186_v36  ;;  %v202_v44 = vmul.f32 %v1465_v42, %v186_v36  ;;  %1128 = vmatprep.subr.mxu0 %v1348_v0 }
 0x11b   :  { %1129 = vmatpush3.msra.mxu0 %v1539_v25 }
 0x11c   :  { %v933_v38 = vclamps-f32 %v214_v37, 0.9999999  ;;  %v203_v45 = vmul.f32 %v202_v44, %v186_v36  ;;  %1130 = vmatprep.subr.mxu0 %v1348_v0 }
 0x11d   :  { %1131 = vmatpush3.msra.mxu0 %v1543_v26 }
 0x11e   :  { %v218_v39 = vsub.f32 1.0, %v933_v38  ;;  %v217_v40 = vadd.f32 1.0, %v933_v38  ;;  %v204_v46 = vmul.f32 %v203_v45, %v186_v36  ;;  %1132 = vmatprep.subr.mxu0 %v1348_v0 }
 0x11f   :  { %1133 = vmatpush3.msra.mxu0 %v1547_v27 }
 0x120   :  { %1241 = vrcp.f32 %v218_v39  ;;  %v206_v51 = vmul.f32 0.33333334, %v204_v46  ;;  %1134 = vmatprep.subr.mxu0 %v1348_v0 }
 0x121   :  { %1135 = vmatpush3.msra.mxu0 %v1551_v28 }
 0x122   :  { %v207_v56 = vsub.f32 %v186_v36, %v206_v51  ;;  %1136 = vmatprep.subr.mxu0 %v1348_v0 }
 0x12d   :  { %v1242_v41 = vpop.eup %1241 }
 0x12e   :  { %v220_v43 = vmul.f32 %v1242_v41, %v217_v40  ;;  %v95_v40 = vld [vmem:[%s1676_s5] sm:$0xff] }
 0x130   :  { %1243 = vlog2.f32 %v220_v43 }
 0x131   :  { %1245 = vrcp.f32 %v1460_v34 }
 0x13d   :  { %v1244_v49 = vpop.eup %1243 }
 0x13e   :  { %v222_v52 = vmul.f32 0.6931472, %v1244_v49  ;;  %v1471_v53 = vpop.eup %1245 }
 0x140   :  { %v223_v54 = vmul.f32 0.5, %v222_v52 }
 0x142   :  { %v225_v57 = vmul.f32 %v1471_v53, %v223_v54 }
 0x144   :  { %v233_v58 = vsel %vm1473_vm4, %v225_v57, %v207_v56 }
 0x145   :  { %v234_v59 = vmul.f32 %v1240_v35, %v233_v58  ;;  %v1593_v35 = vld [vmem:[%s1679_s8] ss:$0 sm:$0xff] }
 0x147   :  { %1071 = vmatmul.mubr.msk.f32.vlgmr.msra.gmra.mxu1 %vm236_vm5, %v234_v59 }
 0x148   :  { %1074 = vmatpush3.msra.mxu1 %v326_v60  ;;  %1105 = vmatprep.mubr.msk.f32.mxu1 %vm1349_vm0, %v1348_v0 }
 0x149   :  { %1075 = vmatprep.subr.mxu1 %v1348_v0 }
 0x14a   :  { %1076 = vmatpush3.msra.mxu1 %v325_v61 }
 0x14b   :  { %1077 = vmatprep.subr.mxu1 %v1348_v0 }
 0x14c   :  { %1078 = vmatpush3.msra.mxu1 %v324_v62  ;;  %v935_v62 = vld [vmem:[%s1678_s7] ss:$0 sm:$0xff]  ;;  %s1351_s7 = smov [#allocation8]  }
 0x14d   :  { %1079 = vmatprep.subr.mxu1 %v1348_v0 }
 0x14e   :  { %1080 = vmatpush3.msra.mxu1 %v323_v63 }
 0x14f   :  { %1081 = vmatprep.subr.mxu1 %v1348_v0 }
 0x150   :  { %1082 = vmatpush3.msra.mxu1 %v322_v1 }
 0x151   :  { %1083 = vmatprep.subr.mxu1 %v1348_v0 }
 0x152   :  { %1084 = vmatpush3.msra.mxu1 %v321_v2  ;;  %v584_v2 = vmul.f32 %v1454_v20, %v1454_v20 }
 0x153   :  { %1085 = vmatprep.subr.mxu1 %v1348_v0 }
 0x154   :  { %1086 = vmatpush3.msra.mxu1 %v320_v3 }
 0x155   :  { %1087 = vmatprep.subr.mxu1 %v1348_v0 }
 0x156   :  { %1088 = vmatpush3.msra.mxu1 %v319_v4 }
 0x157   :  { %1089 = vmatprep.subr.mxu1 %v1348_v0 }
 0x158   :  { %1090 = vmatpush3.msra.mxu1 %v318_v5  ;;  %v589_v5 = vrot.slane %v584_v2, %v1457_v32 }
 0x159   :  { %1091 = vmatprep.subr.mxu1 %v1348_v0 }
 0x15a   :  { %1092 = vmatpush3.msra.mxu1 %v317_v6 }
 0x15b   :  { %1093 = vmatprep.subr.mxu1 %v1348_v0 }
 0x15c   :  { %1094 = vmatpush3.msra.mxu1 %v316_v7  ;;  %v496_v7 = vld [vmem:[%s1680_s9] sm:$0x1]  ;;  %s923_s9 = sshll.u32 %s1351_s7, 4  ;;  %s924_s9 = int_to_ptr.vmem [resolvable:$true] %s923_s9 }
 0x15d   :  { %1095 = vmatprep.subr.mxu1 %v1348_v0  ;;  %s1317_s16 = scalar_lea.vmem %s924_s9, 128  ;;  %p1322_p2 = scmp.lt.s32.totalorder %s924_s9, %s924_s9 }
 0x15e   :  { %1096 = vmatpush3.msra.mxu1 %v315_v8  ;;  %p1318_p1 = scmp.ne.s32.totalorder %s924_s9, %s1317_s16  ;;  %p1323_p3 = scmp.lt.s32.totalorder %s1317_s16, %s1317_s16 }
 0x15f   :  { %1097 = vmatprep.subr.mxu1 %v1348_v0 }
 0x160   :  { %1098 = vmatpush3.msra.mxu1 %v314_v9  ;;  %p1324_p4 = por %p1323_p3, %p1322_p2 }
 0x161   :  { %1099 = vmatprep.subr.mxu1 %v1348_v0 }
 0x162   :  { %1100 = vmatpush3.msra.mxu1 %v313_v10  ;;  %v596_v10 = vrot.slane %v496_v7, %v1457_v32  ;;  %p1325_p5 = pnand %p1324_p4, %p1318_p1 }
 0x163   :  { %1101 = vmatprep.subr.mxu1 %v1348_v0 }
 0x164   :  { %1102 = vmatpush3.msra.mxu1 %v312_v11 }
 0x165   :  { %1103 = vmatprep.subr.mxu1 %v1348_v0 }
 0x166   :  { %1104 = vmatpush3.msra.mxu1 %v311_v12 }
 0x167   :  { %1143 = vmatprep.subr.mxu1 %v1348_v0 }
 0x207   :  { %v306_v29 = vpop.f32.mrf.mxu1 }
 0x208   :  { %v310_v30 = vmul.f32 %v306_v29, %v1437_v15  ;;  %v80_v15 = vld [vmem:[#allocation7 + $0x8] sm:$0xff] }
 0x209   :  { %v1072_v31 = vpop.f32.mrf.mxu1  ;;  %1137 = vmatpush3.msra.mxu0 %v80_v15 }
 0x20a   :  { %1106 = vmatmul.mubr.f32.vlgmr.msra.gmra.mxu1 %v310_v30  ;;  %1138 = vmatprep.subr.mxu0 %v1348_v0 }
 0x20b   :  { %1144 = vmatpush3.msra.mxu1 %v1499_v13  ;;  %1175 = vmatprep.mubr.msk.f32.mxu1 %vm1349_vm0, %v1348_v0 }
 0x20c   :  { %1145 = vmatprep.subr.mxu1 %v1348_v0  ;;  %1139 = vmatpush3.msra.mxu0 %v79_v33 }
 0x20d   :  { %1146 = vmatpush3.msra.mxu1 %v1503_v14  ;;  %1188 = vmatprep.subr.mxu0 %v1348_v0 }
 0x20e   :  { %1147 = vmatprep.subr.mxu1 %v1348_v0 }
 0x20f   :  { %1148 = vmatpush3.msra.mxu1 %v1507_v16 }
 0x210   :  { %1149 = vmatprep.subr.mxu1 %v1348_v0 }
 0x211   :  { %1150 = vmatpush3.msra.mxu1 %v1511_v17 }
 0x212   :  { %1151 = vmatprep.subr.mxu1 %v1348_v0 }
 0x213   :  { %1152 = vmatpush3.msra.mxu1 %v1515_v18 }
 0x214   :  { %1153 = vmatprep.subr.mxu1 %v1348_v0 }
 0x215   :  { %1154 = vmatpush3.msra.mxu1 %v1519_v19 }
 0x216   :  { %1155 = vmatprep.subr.mxu1 %v1348_v0 }
 0x217   :  { %1156 = vmatpush3.msra.mxu1 %v1523_v21 }
 0x218   :  { %1157 = vmatprep.subr.mxu1 %v1348_v0 }
 0x219   :  { %1158 = vmatpush3.msra.mxu1 %v1527_v22 }
 0x21a   :  { %1159 = vmatprep.subr.mxu1 %v1348_v0 }
 0x21b   :  { %1160 = vmatpush3.msra.mxu1 %v1531_v23 }
 0x21c   :  { %1161 = vmatprep.subr.mxu1 %v1348_v0 }
 0x21d   :  { %1162 = vmatpush3.msra.mxu1 %v1535_v24 }
 0x21e   :  { %1163 = vmatprep.subr.mxu1 %v1348_v0 }
 0x21f   :  { %1164 = vmatpush3.msra.mxu1 %v1539_v25 }
 0x220   :  { %1165 = vmatprep.subr.mxu1 %v1348_v0 }
 0x221   :  { %1166 = vmatpush3.msra.mxu1 %v1543_v26 }
 0x222   :  { %1167 = vmatprep.subr.mxu1 %v1348_v0 }
 0x223   :  { %1168 = vmatpush3.msra.mxu1 %v1547_v27 }
 0x224   :  { %1169 = vmatprep.subr.mxu1 %v1348_v0 }
 0x225   :  { %1170 = vmatpush3.msra.mxu1 %v1551_v28 }
 0x226   :  { %1171 = vmatprep.subr.mxu1 %v1348_v0 }
 0x227   :  { %1172 = vmatpush3.msra.mxu1 %v80_v15 }
 0x228   :  { %1173 = vmatprep.subr.mxu1 %v1348_v0 }
 0x229   :  { %1174 = vmatpush3.msra.mxu1 %v79_v33 }
 0x22a   :  { %1178 = vmatprep.subr.mxu1 %v1348_v0 }
 0x2ca   :  { %v1595_v36 = vpop.f32.mrf.mxu1 }
 0x2cb   :  { %v397_v37 = vmul.f32 %v1595_v36, %v1595_v36  ;;  %v503_v38 = vmul.f32 %v1593_v35, %v1595_v36 }
 0x2cc   :  { %v1107_v39 = vpop.f32.mrf.mxu1 }
 0x2cd   :  { %1141 = vmatmul.mubr.f32.vlgmr.msra.gmra.mxu0 %v397_v37  ;;  %1176 = vmatmul.mubr.f32.vlgmr.msra.gmra.mxu1 %v503_v38 }
 0x2ce   :  { %1180 = vmatprep.mubr.msk.f32.mxu1 %vm1349_vm0, %v1348_v0  ;;  %1189 = vmatpush3.msra.mxu0 %v1499_v13 }
 0x2cf   :  { %1190 = vmatprep.subr.mxu0 %v1348_v0  ;;  %1220 = vmatprep.mubr.msk.f32.mxu0 %vm1349_vm0, %v1348_v0 }
 0x2d0   :  { %1191 = vmatpush3.msra.mxu0 %v1503_v14  ;;  %1179 = vmatpush3.msra.mxu1 %v95_v40 }
 0x2d1   :  { %1192 = vmatprep.subr.mxu0 %v1348_v0  ;;  %1183 = vmatprep.subr.mxu1 %v1348_v0 }
 0x2d2   :  { %1193 = vmatpush3.msra.mxu0 %v1507_v16 }
 0x2d3   :  { %1194 = vmatprep.subr.mxu0 %v1348_v0 }
 0x2d4   :  { %1195 = vmatpush3.msra.mxu0 %v1511_v17  ;;  %v603_v17 = vmul.f32 %v496_v7, %v1454_v20 }
 0x2d5   :  { %1196 = vmatprep.subr.mxu0 %v1348_v0 }
 0x2d6   :  { %1197 = vmatpush3.msra.mxu0 %v1515_v18  ;;  %v608_v18 = vrot.slane %v603_v17, %v1457_v32 }
 0x2d7   :  { %1198 = vmatprep.subr.mxu0 %v1348_v0 }
 0x2d8   :  { %1199 = vmatpush3.msra.mxu0 %v1519_v19 }
 0x2d9   :  { %1200 = vmatprep.subr.mxu0 %v1348_v0 }
 0x2da   :  { %1201 = vmatpush3.msra.mxu0 %v1523_v21 }
 0x2db   :  { %1202 = vmatprep.subr.mxu0 %v1348_v0 }
 0x2dc   :  { %1203 = vmatpush3.msra.mxu0 %v1527_v22 }
 0x2dd   :  { %1204 = vmatprep.subr.mxu0 %v1348_v0 }
 0x2de   :  { %1205 = vmatpush3.msra.mxu0 %v1531_v23 }
 0x2df   :  { %1206 = vmatprep.subr.mxu0 %v1348_v0 }
 0x2e0   :  { %1207 = vmatpush3.msra.mxu0 %v1535_v24 }
 0x2e1   :  { %1208 = vmatprep.subr.mxu0 %v1348_v0 }
 0x2e2   :  { %1209 = vmatpush3.msra.mxu0 %v1539_v25 }
 0x2e3   :  { %1210 = vmatprep.subr.mxu0 %v1348_v0 }
 0x2e4   :  { %1211 = vmatpush3.msra.mxu0 %v1543_v26 }
 0x2e5   :  { %1212 = vmatprep.subr.mxu0 %v1348_v0 }
 0x2e6   :  { %1213 = vmatpush3.msra.mxu0 %v1547_v27 }
 0x2e7   :  { %1214 = vmatprep.subr.mxu0 %v1348_v0 }
 0x2e8   :  { %1215 = vmatpush3.msra.mxu0 %v1551_v28 }
 0x2e9   :  { %1216 = vmatprep.subr.mxu0 %v1348_v0 }
 0x2ea   :  { %1217 = vmatpush3.msra.mxu0 %v80_v15 }
 0x2eb   :  { %1218 = vmatprep.subr.mxu0 %v1348_v0 }
 0x2ec   :  { %1219 = vmatpush3.msra.mxu0 %v79_v33 }
 0x38d   :  { %v464_v41 = vpop.f32.mrf.mxu0  ;;  %v570_v43 = vpop.f32.mrf.mxu1 }
 0x38e   :  { %v468_v44 = vmax.f32 %v464_v41, 1e-30 }
 0x38f   :  { %v1142_v45 = vpop.f32.mrf.mxu0  ;;  %v1177_v46 = vpop.f32.mrf.mxu1 }
 0x390   :  { %1247 = vrsqrt.f32 %v468_v44 }
 0x39d   :  { %v1248_v47 = vpop.eup %1247 }
 0x39e   :  { %v470_v48 = vmul.f32 %v1248_v47, %v468_v44 }
 0x3a0   :  { %v471_v49 = vmul.f32 %v470_v48, %v1465_v42  ;;  %v476_v50 = vmul.f32 %v470_v48, %v1460_v34  ;;  %v575_v34 = vmul.f32 2.0, %v1454_v20 }
 0x3a2   :  { %1249 = vtanh.f32 %v476_v50  ;;  %v472_v51 = vmul.f32 %v471_v49, %v470_v48  ;;  %v580_v55 = vrot.slane %v575_v34, %v1457_v32 }
 0x3a4   :  { %v473_v52 = vmul.f32 %v472_v51, %v470_v48 }
 0x3a6   :  { %v474_v54 = vmul.f32 0.33333334, %v473_v52 }
 0x3a8   :  { %v475_v57 = vadd.f32 %v474_v54, %v470_v48 }
 0x3af   :  { %v1250_v56 = vpop.eup %1249 }
 0x3b0   :  { %v478_v58 = vmul.f32 %v1250_v56, %v1471_v53 }
 0x3b2   :  { %v479_v59 = vsel %vm1473_vm4, %v478_v58, %v475_v57 }
 0x3b3   :  { %v480_v60 = vmul.f32 %v1248_v47, %v479_v59 }
 0x3b5   :  { %v481_v61 = vmul.f32 %v480_v60, %v470_v48 }
 0x3b7   :  { %1251 = vrcp.f32 %v481_v61  ;;  %vm488_vm6 = vcmp.gt.f32.partialorder %v481_v61, %v935_v62 }
 0x3c4   :  { %v1252_v63 = vpop.eup %1251 }
 0x3c5   :  { %v490_v1 = vmul.f32 %v1252_v63, %v935_v62 }
 0x3c7   :  { %v491_v3 = vsel %vm488_vm6, %v490_v1, 1.0 }
 0x3c8   :  { %v492_v53 = vmul.f32 %v491_v3, %v480_v60 }
 0x3ca   :  { %v493_v4 = vmul.f32 %v492_v53, %v492_v53  ;;  %v574_v6 = vmul.f32 %v570_v43, %v492_v53 }
 0x3cc   :  { %v494_v8 = vmul.f32 %v493_v4, %v468_v44  ;;  %v582_v9 = vmul.f32 %v580_v55, %v574_v6 }
 0x3ce   :  { %v591_v11 = vmul.f32 %v589_v5, %v494_v8  ;;  %v583_v12 = vsub.f32 1.0, %v582_v9  ;;  %v612_v22 = vmul.f32 %v494_v8, %v1465_v42 }
 0x3d0   :  { %v598_v13 = vmul.f32 %v596_v10, %v591_v11  ;;  %v610_v19 = vsub.f32 %v583_v12, %v608_v18  ;;  %v613_v25 = vadd.f32 1.0, %v612_v22 }
 0x3d2   :  { %v599_v14 = vadd.f32 %v598_v13, %v583_v12 }
 0x3d4   :  { %v600_v16 = vmax.f32 %v599_v14, 1e-15 }
 0x3d6   :  { %1253 = vrcp.f32 %v600_v16 }
 0x3e3   :  { %v1254_v21 = vpop.eup %1253 }
 0x3e4   :  { %v611_v23 = vmul.f32 %v1254_v21, %v610_v19  ;;  %v614_v26 = vmul.f32 %v1254_v21, %v613_v25 }
 0x3e6   :  { %v615_v24 = vmul.f32 %v611_v23, %v492_v53 }
 0x3e8   :  { %1181 = vmatmul.mubr.msk.f32.vlgmr.msra.gmra.mxu1 %vm236_vm5, %v615_v24 }
 0x3e9   :  { %1184 = vmatpush3.msra.mxu1 %v95_v40  ;;  %1185 = vmatprep.mubr.msk.f32.mxu1 %vm1349_vm0, %v1348_v0 }
 0x3ea   :  { %1223 = vmatprep.subr.mxu1 %v1348_v0 }
 0x3ec   :  { %1186 = vmatmul.mubr.msk.f32.vlgmr.msra.gmra.mxu1 %vm236_vm5, %v614_v26 }
 0x3ed   :  { %1224 = vmatpush3.msra.mxu1 %v95_v40  ;;  %1225 = vmatprep.mubr.msk.f32.mxu1 %vm1349_vm0, %v1348_v0 }
 0x4a8   :  { %v685_v20 = vpop.f32.mrf.mxu1 }
 0x4a9   :  { %v689_v27 = vmul.f32 %v685_v20, %v1595_v36 }
 0x4aa   :  { %v1182_v32 = vpop.f32.mrf.mxu1 }
 0x4ac   :  { %v759_v42 = vpop.f32.mrf.mxu1 }
 0x4ad   :  { %v763_v28 = vmul.f32 %v1593_v35, %v759_v42 }
 0x4ae   :  { %v1187_v29 = vpop.f32.mrf.mxu1 }
 0x4af   :  { %v764_v30 = vadd.f32 %v763_v28, %v689_v27 }
 0x4b1   :  { %v765_v31 = vmul.f32 %v764_v30, %v764_v30 }
 0x4b3   :  { %1221 = vmatmul.mubr.f32.vlgmr.msra.gmra.mxu0 %v765_v31 }
 0x573   :  { %v832_v15 = vpop.f32.mrf.mxu0 }
 0x574   :  { %v836_v33 = vmax.f32 %v832_v15, 1e-30 }
 0x575   :  { %v1222_v37 = vpop.f32.mrf.mxu0 }
 0x576   :  { %1255 = vrsqrt.f32 %v836_v33 }
 0x583   :  { %v1256_v38 = vpop.eup %1255 }
 0x584   :  { %v838_v39 = vmul.f32 %v1256_v38, %v836_v33  ;;  %v840_v40 = vmul.f32 %v1256_v38, %v935_v62 }
 0x586   :  { %vm839_vm7 = vcmp.gt.f32.partialorder %v838_v39, %v935_v62 }
 0x587   :  { %v841_v0 = vsel %vm839_vm7, %v840_v40, 1.0 }
 0x588   :  { %1226 = vmatmul.mubr.msk.f32.vlgmr.msra.gmra.mxu1 %vm236_vm5, %v841_v0 }
 0x648   :  { %v911_v36 = vpop.f32.mrf.mxu1 }
 0x649   :  { %v915_v41 = vmul.f32 %v911_v36, %v764_v30 }
 0x64a   :  { %v1227_v35 = vpop.f32.mrf.mxu1 }
 0x64b   :  { %916 = vst [vmem:[#allocation8] sm:$0xff] %v915_v41 }
 0x64c   :  { %1328 = shalt.err (!%p1325_p5)
}
 0x64d   :  { %926 = dma.vmem_to_hbm [thread:$0]  %s924_s9, 128, %s1681_s10, [#allocation4]  }
 0x64e   :  { %1341 = dma.done.wait [#allocation4], 128  }
 0x64f   :  { %1342 = vsyncadd [#allocation4], 4294967168 }
 0x650   :  { %930 = vsyncpa [#allocation3], 1 }
 0x651   :  { %931 = vsyncpa [#allocation6], 1 }
 0x652   :  { %932 = vsyncpa [#allocation4], 1 }

</bundles_post_ra>
